<compile_context>
chip_gen: v5e
topology: v5e:2x2
jax: 0.10.0
libtpu: 0.0.40
codegen_flags: <defaults>
</compile_context>

<pallas_src>
import functools

import jax
import jax.numpy as jnp
from jax import lax
from jax.experimental import pallas as pl
from jax.experimental.pallas import tpu as pltpu


def _vmem_limit_bytes():
    """Per-generation scoped-VMEM limit (leave headroom below physical)."""
    try:
        cap = int(pltpu.get_tpu_info().vmem_capacity_bytes)
    except Exception:
        cap = 64 << 20  # conservative fallback (safe on v5e/v6e/v7x)
    return max(32 << 20, min(cap * 3 // 4, 100 << 20))


def _est_vmem_bytes(tc, tp, v_pad, m, im_bytes, out_bytes, sv):
    """Rough per-step VMEM footprint for tile candidates (bytes)."""
    img = tc * v_pad * m * im_bytes * 2        # image block (worst case 2 bufs)
    crd = 2 * tp * 4 * 2                       # coords block (double-buffered)
    out = tc * tp * out_bytes * 2              # output block (double-buffered)
    tmp = tc * v_pad * tp * 4                  # stage-1 MXU result (f32)
    wm = m * tp * 4                            # stage-1 weight matrix
    st2 = (tc * sv + sv + tc) * tp * 4         # stage-2 slab product + weights + acc
    return img + crd + out + tmp + wm + st2


def _choose_tiles(C, P, v_pad, m, im_bytes, out_bytes, sv, budget):
    """Pick (TC, TP): channel tile + lane-dense pixel tile within the budget."""
    # Channel tile: full C preferred; shrink in divisors that are multiples of
    # 8 (BlockSpec sublane constraint) only if the image block hogs the budget.
    tc_cands = [C] + sorted((d for d in range(8, C, 8) if C % d == 0),
                            reverse=True)
    tc = tc_cands[-1]
    for cand in tc_cands:
        if cand * v_pad * m * im_bytes * 2 <= budget // 2:
            tc = cand
            break
    # Pixel tile: largest lane-dense divisor of P whose live set fits.
    tp_cands = [t for t in (2048, 1024, 512, 256, 128) if P % t == 0] or [P]
    tp = tp_cands[-1]
    for cand in tp_cands:
        if _est_vmem_bytes(tc, cand, v_pad, m, im_bytes, out_bytes, sv) <= budget:
            tp = cand
            break
    return tc, tp


def _warp_kernel(im_ref, crd_ref, out_ref, *, TC, V_pad, M, TP, SV, NCHUNK):
    # im_ref : (1, TC*V_pad, M)  image channel block, MXU-contracted axis last
    # crd_ref: (1, 2, TP)        row 0: MXU-axis source coord, row 1: VPU-axis
    # out_ref: (1, TC, TP)       warped output tile (lane-dense in P)
    f32 = jnp.float32
    crd = crd_ref[0]                                     # (2, TP) f32
    pm = crd[0:1, :]                                     # (1, TP)
    pv = crd[1:2, :]                                     # (1, TP)

    # Stage 1 (MXU): contract the larger source axis.  Hat-function bilinear
    # weights; out-of-range coords never overlap [0, M) -> zeros padding.
    km = lax.broadcasted_iota(jnp.int32, (M, TP), 0).astype(f32)
    w_m = jnp.maximum(0.0, 1.0 - jnp.abs(pm - km))       # (M, TP)
    im2d = im_ref[0]                                     # storage dtype, no upcast
    tmp = jnp.dot(im2d, w_m.astype(im2d.dtype),
                  preferred_element_type=jnp.float32)    # (TC*V_pad, TP) f32

    # Stage 2 (VPU + sublane reduce): contract the smaller source axis in
    # SV-row slabs so the full (TC, V_pad, TP) product is never live at once.
    tmp3 = tmp.reshape(TC, V_pad, TP)                    # free: V_pad % 8 == 0
    acc = jnp.zeros((TC, TP), f32)
    for ci in range(NCHUNK):                             # static slab loop
        v0 = ci * SV
        kv = (v0 + lax.broadcasted_iota(jnp.int32, (SV, TP), 0)).astype(f32)
        w_v = jnp.maximum(0.0, 1.0 - jnp.abs(pv - kv))   # (SV, TP)
        acc = acc + jnp.sum(tmp3[:, v0:v0 + SV, :] * w_v[None, :, :], axis=1)
    out_ref[0] = acc.astype(out_ref.dtype)


def gaussian_warping_forward(im, w, padding_mode="zeros"):
    """im: (B, C, Hin, Win) NCHW image; w: (B, 2, Hout, Wout) NCHW flow."""
    assert padding_mode == "zeros"  # only 'zeros' padding implemented
    B, C, Hin, Win = im.shape
    Bw, two, Hout, Wout = w.shape
    assert Bw == B and two == 2
    P = Hout * Wout

    # --- Hoisted DenseGridGen + grid_sample unnormalization (align_corners=F).
    xs = jnp.linspace(-1.0, 1.0, Wout, dtype=jnp.float32)
    ys = jnp.linspace(-1.0, 1.0, Hout, dtype=jnp.float32)
    gx = xs[None, None, :] - w[:, 0].astype(jnp.float32)   # (B, Hout, Wout)
    gy = ys[None, :, None] - w[:, 1].astype(jnp.float32)
    px = ((gx + 1.0) * Win - 1.0) * 0.5                    # source x coordinate
    py = ((gy + 1.0) * Hin - 1.0) * 0.5                    # source y coordinate

    # --- Put the LARGER source axis on the MXU; the smaller one on the VPU.
    if Win >= Hin:
        im_src = im                                        # stage-2 axis = y
        M, V = Win, Hin
        coord_m, coord_v = px, py
    else:
        im_src = jnp.swapaxes(im, 2, 3)                    # stage-2 axis = x
        M, V = Hin, Win
        coord_m, coord_v = py, px
    coords = jnp.stack([coord_m, coord_v], axis=1).reshape(B, 2, P)
    coords = coords.astype(jnp.float32)

    # --- Pad the stage-2 axis to a sublane multiple (zero rows contribute 0),
    #     so the in-kernel reshape of the f32 stage-1 result is layout-free.
    sub = 8 if im.dtype.itemsize >= 4 else 16
    V_pad = -(-V // sub) * sub
    if V_pad != V:
        im_src = jnp.pad(im_src, ((0, 0), (0, 0), (0, V_pad - V), (0, 0)))
    im_2d = im_src.reshape(B, C * V_pad, M)

    # --- Static stage-2 slab size (divides V_pad, which is a multiple of 8).
    if V_pad % 32 == 0 and V_pad >= 64:
        SV = 32
    elif V_pad % 16 == 0 and V_pad >= 32:
        SV = 16
    else:
        SV = 8 if V_pad >= 8 else V_pad
    NCHUNK = V_pad // SV

    # --- VMEM-budgeted tile sizes + explicit scoped-VMEM limit.
    vmem_limit = _vmem_limit_bytes()
    budget = max(int(vmem_limit * 0.6), 4 << 20)
    im_bytes = im.dtype.itemsize
    TC, TP = _choose_tiles(C, P, V_pad, M, im_bytes, im_bytes, SV, budget)
    NC, NP = C // TC, P // TP

    kernel = functools.partial(
        _warp_kernel, TC=TC, V_pad=V_pad, M=M, TP=TP, SV=SV, NCHUNK=NCHUNK)

    def call(image_spec):
        return pl.pallas_call(
            kernel,
            out_shape=jax.ShapeDtypeStruct((B, C, P), im.dtype),
            grid=(B, NC, NP),
            in_specs=[
                image_spec,
                pl.BlockSpec((1, 2, TP), lambda b, c, p: (b, 0, p)),
            ],
            out_specs=pl.BlockSpec((1, TC, TP), lambda b, c, p: (b, c, p)),
            compiler_params=pltpu.CompilerParams(
                dimension_semantics=("parallel", "parallel", "parallel"),
                vmem_limit_bytes=vmem_limit),
        )(im_2d, coords)

    img_block = (1, TC * V_pad, M)
    img_map = lambda b, c, p: (b, c, 0)
    try:
        # Image block only changes with (b, c): single-buffer it so it does not
        # double the largest VMEM consumer; the one exposed DMA per (b, c) is
        # amortized over the P/TP pixel tiles.
        out_flat = call(pl.BlockSpec(img_block, img_map,
                                     pipeline_mode=pl.Buffered(1)))
    except Exception:
        out_flat = call(pl.BlockSpec(img_block, img_map))

    return out_flat.reshape(B, C, Hout, Wout)


def _reference(im, w):
    """Pure-JAX gather-based reference (grid_sample bilinear, zeros padding)."""
    B, C, Hin, Win = im.shape
    _, _, Hout, Wout = w.shape
    xs = jnp.linspace(-1.0, 1.0, Wout)
    ys = jnp.linspace(-1.0, 1.0, Hout)
    gx = xs[None, None, :] - w[:, 0]
    gy = ys[None, :, None] - w[:, 1]
    px = ((gx + 1.0) * Win - 1.0) * 0.5
    py = ((gy + 1.0) * Hin - 1.0) * 0.5
    x0 = jnp.floor(px).astype(jnp.int32)
    y0 = jnp.floor(py).astype(jnp.int32)
    wx1 = px - x0
    wx0 = 1.0 - wx1
    wy1 = py - y0
    wy0 = 1.0 - wy1

    b_idx = jnp.arange(B)[:, None, None]

    def tap(yi, xi):
        valid = ((xi >= 0) & (xi < Win) & (yi >= 0) & (yi < Hin)).astype(im.dtype)
        xc = jnp.clip(xi, 0, Win - 1)
        yc = jnp.clip(yi, 0, Hin - 1)
        v = im[b_idx, :, yc, xc]            # (B, Hout, Wout, C)
        return v * valid[..., None]

    out = (tap(y0, x0) * (wy0 * wx0)[..., None]
           + tap(y0, x0 + 1) * (wy0 * wx1)[..., None]
           + tap(y0 + 1, x0) * (wy1 * wx0)[..., None]
           + tap(y0 + 1, x0 + 1) * (wy1 * wx1)[..., None])
    return jnp.transpose(out, (0, 3, 1, 2))


if __name__ == "__main__":
    key = jax.random.PRNGKey(0)
    k_im, k_w = jax.random.split(key)
    B, C, H, W = 2, 4, 16, 16
    std = 0.25  # module's std: used here to scale the (Gaussian) warp field
    im = jax.random.normal(k_im, (B, C, H, W), dtype=jnp.float32)
    w = std * jax.random.normal(k_w, (B, 2, H, W), dtype=jnp.float32)

    out = gaussian_warping_forward(im, w, padding_mode="zeros")
    out = jax.block_until_ready(out)

    ref = _reference(im, w)
    assert out.shape == (B, C, H, W)
    assert jnp.allclose(out, ref, atol=1e-4, rtol=1e-4), "mismatch vs reference"
    print("KERNEL_OK")
</pallas_src>

<mosaic_0001>
module attributes {stable_mosaic.version = 11 : i64} {
  func.func @_warp_kernel(%arg0: i32, %arg1: i32, %arg2: i32, %arg3: memref<1x64x16xf32, #tpu.memory_space<vmem>>, %arg4: memref<1x2x256xf32, #tpu.memory_space<vmem>>, %arg5: memref<1x4x256xf32, #tpu.memory_space<vmem>>) attributes {dimension_semantics = [#tpu.dimension_semantics<parallel>, #tpu.dimension_semantics<parallel>, #tpu.dimension_semantics<parallel>], iteration_bounds = array<i64: 2, 1, 1>, scalar_prefetch = 0 : i64, scratch_operands = 0 : i64, tpu.core_type = #tpu.core_type<tc>, window_params = [{pipeline_mode = #tpu.pipeline_mode<synchronous>, transform_indices = @transform_0, window_bounds = array<i64: 1, 64, 16>}, {transform_indices = @transform_1, window_bounds = array<i64: 1, 2, 256>}, {transform_indices = @transform_2, window_bounds = array<i64: 1, 4, 256>}]} {
    %c0 = arith.constant 0 : index
    %c0_0 = arith.constant 0 : index
    %c0_1 = arith.constant 0 : index
    %0 = vector.load %arg4[%c0, %c0_0, %c0_1] : memref<1x2x256xf32, #tpu.memory_space<vmem>>, vector<1x2x256xf32>
    %1 = vector.shape_cast %0 : vector<1x2x256xf32> to vector<2x256xf32>
    %2 = vector.extract_strided_slice %1 {offsets = [0, 0], sizes = [1, 256], strides = [1, 1]} : vector<2x256xf32> to vector<1x256xf32>
    %3 = vector.extract_strided_slice %1 {offsets = [1, 0], sizes = [1, 256], strides = [1, 1]} : vector<2x256xf32> to vector<1x256xf32>
    %4 = tpu.iota {dimensions = array<i32: 0>} : vector<16x256xi32>
    %5 = arith.sitofp %4 : vector<16x256xi32> to vector<16x256xf32>
    %6 = vector.broadcast %2 : vector<1x256xf32> to vector<16x256xf32>
    %7 = arith.subf %6, %5 : vector<16x256xf32>
    %8 = math.absf %7 : vector<16x256xf32>
    %cst = arith.constant 1.000000e+00 : f32
    %9 = vector.broadcast %cst : f32 to vector<16x256xf32>
    %10 = arith.subf %9, %8 : vector<16x256xf32>
    %cst_2 = arith.constant 0.000000e+00 : f32
    %11 = vector.broadcast %cst_2 : f32 to vector<16x256xf32>
    %12 = arith.maximumf %11, %10 : vector<16x256xf32>
    %c0_3 = arith.constant 0 : index
    %c0_4 = arith.constant 0 : index
    %c0_5 = arith.constant 0 : index
    %13 = vector.load %arg3[%c0_3, %c0_4, %c0_5] : memref<1x64x16xf32, #tpu.memory_space<vmem>>, vector<1x64x16xf32>
    %14 = vector.shape_cast %13 : vector<1x64x16xf32> to vector<64x16xf32>
    %cst_6 = arith.constant dense<0.000000e+00> : vector<64x256xf32>
    %15 = tpu.matmul %14, %12, %cst_6 {dimension_numbers = #tpu.dot_dimension_numbers<[1], [0], [0], [1], [0, 0, 1, 1], [], []>} : vector<64x16xf32>, vector<16x256xf32>, vector<64x256xf32> -> vector<64x256xf32>
    %16 = vector.shape_cast %15 : vector<64x256xf32> to vector<4x16x256xf32>
    %cst_7 = arith.constant 0.000000e+00 : f32
    %17 = vector.broadcast %cst_7 : f32 to vector<4x256xf32>
    %18 = tpu.iota {dimensions = array<i32: 0>} : vector<8x256xi32>
    %c0_i32 = arith.constant 0 : i32
    %19 = vector.broadcast %c0_i32 : i32 to vector<8x256xi32>
    %20 = arith.addi %19, %18 : vector<8x256xi32>
    %21 = arith.sitofp %20 : vector<8x256xi32> to vector<8x256xf32>
    %22 = vector.broadcast %3 : vector<1x256xf32> to vector<8x256xf32>
    %23 = arith.subf %22, %21 : vector<8x256xf32>
    %24 = math.absf %23 : vector<8x256xf32>
    %cst_8 = arith.constant 1.000000e+00 : f32
    %25 = vector.broadcast %cst_8 : f32 to vector<8x256xf32>
    %26 = arith.subf %25, %24 : vector<8x256xf32>
    %cst_9 = arith.constant 0.000000e+00 : f32
    %27 = vector.broadcast %cst_9 : f32 to vector<8x256xf32>
    %28 = arith.maximumf %27, %26 : vector<8x256xf32>
    %29 = vector.extract_strided_slice %16 {offsets = [0, 0, 0], sizes = [4, 8, 256], strides = [1, 1, 1]} : vector<4x16x256xf32> to vector<4x8x256xf32>
    %30 = vector.shape_cast %28 : vector<8x256xf32> to vector<1x8x256xf32>
    %31 = vector.broadcast %30 : vector<1x8x256xf32> to vector<4x8x256xf32>
    %32 = arith.mulf %29, %31 : vector<4x8x256xf32>
    %cst_10 = arith.constant dense<0.000000e+00> : vector<4x256xf32>
    %33 = vector.multi_reduction <add>, %32, %cst_10 [1] : vector<4x8x256xf32> to vector<4x256xf32>
    %34 = arith.addf %17, %33 : vector<4x256xf32>
    %35 = tpu.iota {dimensions = array<i32: 0>} : vector<8x256xi32>
    %c8_i32 = arith.constant 8 : i32
    %36 = vector.broadcast %c8_i32 : i32 to vector<8x256xi32>
    %37 = arith.addi %36, %35 : vector<8x256xi32>
    %38 = arith.sitofp %37 : vector<8x256xi32> to vector<8x256xf32>
    %39 = vector.broadcast %3 : vector<1x256xf32> to vector<8x256xf32>
    %40 = arith.subf %39, %38 : vector<8x256xf32>
    %41 = math.absf %40 : vector<8x256xf32>
    %cst_11 = arith.constant 1.000000e+00 : f32
    %42 = vector.broadcast %cst_11 : f32 to vector<8x256xf32>
    %43 = arith.subf %42, %41 : vector<8x256xf32>
    %cst_12 = arith.constant 0.000000e+00 : f32
    %44 = vector.broadcast %cst_12 : f32 to vector<8x256xf32>
    %45 = arith.maximumf %44, %43 : vector<8x256xf32>
    %46 = vector.extract_strided_slice %16 {offsets = [0, 8, 0], sizes = [4, 8, 256], strides = [1, 1, 1]} : vector<4x16x256xf32> to vector<4x8x256xf32>
    %47 = vector.shape_cast %45 : vector<8x256xf32> to vector<1x8x256xf32>
    %48 = vector.broadcast %47 : vector<1x8x256xf32> to vector<4x8x256xf32>
    %49 = arith.mulf %46, %48 : vector<4x8x256xf32>
    %cst_13 = arith.constant dense<0.000000e+00> : vector<4x256xf32>
    %50 = vector.multi_reduction <add>, %49, %cst_13 [1] : vector<4x8x256xf32> to vector<4x256xf32>
    %51 = arith.addf %34, %50 : vector<4x256xf32>
    %c0_14 = arith.constant 0 : index
    %c0_15 = arith.constant 0 : index
    %c0_16 = arith.constant 0 : index
    %52 = vector.load %arg5[%c0_14, %c0_15, %c0_16] : memref<1x4x256xf32, #tpu.memory_space<vmem>>, vector<1x4x256xf32>
    %53 = vector.shape_cast %52 : vector<1x4x256xf32> to vector<4x256xf32>
    %54 = vector.shape_cast %51 : vector<4x256xf32> to vector<1x4x256xf32>
    tpu.vector_store %arg5[%c0_14, %c0_15, %c0_16], %54 {strides = array<i32>} : memref<1x4x256xf32, #tpu.memory_space<vmem>>, vector<1x4x256xf32>,
    return
  }
  func.func @transform_0(%arg0: i32, %arg1: i32, %arg2: i32) -> (i32, i32, i32) {
    %c0_i32 = arith.constant 0 : i32
    %c0_i32_0 = arith.constant 0 : i32
    return %arg0, %arg1, %c0_i32 : i32, i32, i32
  }
  func.func @transform_1(%arg0: i32, %arg1: i32, %arg2: i32) -> (i32, i32, i32) {
    %c0_i32 = arith.constant 0 : i32
    %c0_i32_0 = arith.constant 0 : i32
    return %arg0, %c0_i32, %arg2 : i32, i32, i32
  }
  func.func @transform_2(%arg0: i32, %arg1: i32, %arg2: i32) -> (i32, i32, i32) {
    %c0_i32 = arith.constant 0 : i32
    return %arg0, %arg1, %arg2 : i32, i32, i32
  }
}

module attributes {stable_mosaic.version = 11 : i64} {
  func.func @_warp_kernel(%arg0: i32, %arg1: i32, %arg2: i32, %arg3: memref<1x64x16xf32, #tpu.memory_space<vmem>>, %arg4: memref<1x2x256xf32, #tpu.memory_space<vmem>>, %arg5: memref<1x4x256xf32, #tpu.memory_space<vmem>>) attributes {dimension_semantics = [#tpu.dimension_semantics<parallel>, #tpu.dimension_semantics<parallel>, #tpu.dimension_semantics<parallel>], iteration_bounds = array<i64: 2, 1, 1>, scalar_prefetch = 0 : i64, scratch_operands = 0 : i64, tpu.core_type = #tpu.core_type<tc>, window_params = [{transform_indices = @transform_0, window_bounds = array<i64: 1, 64, 16>}, {transform_indices = @transform_1, window_bounds = array<i64: 1, 2, 256>}, {transform_indices = @transform_2, window_bounds = array<i64: 1, 4, 256>}]} {
    %c0 = arith.constant 0 : index
    %c0_0 = arith.constant 0 : index
    %c0_1 = arith.constant 0 : index
    %0 = vector.load %arg4[%c0, %c0_0, %c0_1] : memref<1x2x256xf32, #tpu.memory_space<vmem>>, vector<1x2x256xf32>
    %1 = vector.shape_cast %0 : vector<1x2x256xf32> to vector<2x256xf32>
    %2 = vector.extract_strided_slice %1 {offsets = [0, 0], sizes = [1, 256], strides = [1, 1]} : vector<2x256xf32> to vector<1x256xf32>
    %3 = vector.extract_strided_slice %1 {offsets = [1, 0], sizes = [1, 256], strides = [1, 1]} : vector<2x256xf32> to vector<1x256xf32>
    %4 = tpu.iota {dimensions = array<i32: 0>} : vector<16x256xi32>
    %5 = arith.sitofp %4 : vector<16x256xi32> to vector<16x256xf32>
    %6 = vector.broadcast %2 : vector<1x256xf32> to vector<16x256xf32>
    %7 = arith.subf %6, %5 : vector<16x256xf32>
    %8 = math.absf %7 : vector<16x256xf32>
    %cst = arith.constant 1.000000e+00 : f32
    %9 = vector.broadcast %cst : f32 to vector<16x256xf32>
    %10 = arith.subf %9, %8 : vector<16x256xf32>
    %cst_2 = arith.constant 0.000000e+00 : f32
    %11 = vector.broadcast %cst_2 : f32 to vector<16x256xf32>
    %12 = arith.maximumf %11, %10 : vector<16x256xf32>
    %c0_3 = arith.constant 0 : index
    %c0_4 = arith.constant 0 : index
    %c0_5 = arith.constant 0 : index
    %13 = vector.load %arg3[%c0_3, %c0_4, %c0_5] : memref<1x64x16xf32, #tpu.memory_space<vmem>>, vector<1x64x16xf32>
    %14 = vector.shape_cast %13 : vector<1x64x16xf32> to vector<64x16xf32>
    %cst_6 = arith.constant dense<0.000000e+00> : vector<64x256xf32>
    %15 = tpu.matmul %14, %12, %cst_6 {dimension_numbers = #tpu.dot_dimension_numbers<[1], [0], [0], [1], [0, 0, 1, 1], [], []>} : vector<64x16xf32>, vector<16x256xf32>, vector<64x256xf32> -> vector<64x256xf32>
    %16 = vector.shape_cast %15 : vector<64x256xf32> to vector<4x16x256xf32>
    %cst_7 = arith.constant 0.000000e+00 : f32
    %17 = vector.broadcast %cst_7 : f32 to vector<4x256xf32>
    %18 = tpu.iota {dimensions = array<i32: 0>} : vector<8x256xi32>
    %c0_i32 = arith.constant 0 : i32
    %19 = vector.broadcast %c0_i32 : i32 to vector<8x256xi32>
    %20 = arith.addi %19, %18 : vector<8x256xi32>
    %21 = arith.sitofp %20 : vector<8x256xi32> to vector<8x256xf32>
    %22 = vector.broadcast %3 : vector<1x256xf32> to vector<8x256xf32>
    %23 = arith.subf %22, %21 : vector<8x256xf32>
    %24 = math.absf %23 : vector<8x256xf32>
    %cst_8 = arith.constant 1.000000e+00 : f32
    %25 = vector.broadcast %cst_8 : f32 to vector<8x256xf32>
    %26 = arith.subf %25, %24 : vector<8x256xf32>
    %cst_9 = arith.constant 0.000000e+00 : f32
    %27 = vector.broadcast %cst_9 : f32 to vector<8x256xf32>
    %28 = arith.maximumf %27, %26 : vector<8x256xf32>
    %29 = vector.extract_strided_slice %16 {offsets = [0, 0, 0], sizes = [4, 8, 256], strides = [1, 1, 1]} : vector<4x16x256xf32> to vector<4x8x256xf32>
    %30 = vector.shape_cast %28 : vector<8x256xf32> to vector<1x8x256xf32>
    %31 = vector.broadcast %30 : vector<1x8x256xf32> to vector<4x8x256xf32>
    %32 = arith.mulf %29, %31 : vector<4x8x256xf32>
    %cst_10 = arith.constant dense<0.000000e+00> : vector<4x256xf32>
    %33 = vector.multi_reduction <add>, %32, %cst_10 [1] : vector<4x8x256xf32> to vector<4x256xf32>
    %34 = arith.addf %17, %33 : vector<4x256xf32>
    %35 = tpu.iota {dimensions = array<i32: 0>} : vector<8x256xi32>
    %c8_i32 = arith.constant 8 : i32
    %36 = vector.broadcast %c8_i32 : i32 to vector<8x256xi32>
    %37 = arith.addi %36, %35 : vector<8x256xi32>
    %38 = arith.sitofp %37 : vector<8x256xi32> to vector<8x256xf32>
    %39 = vector.broadcast %3 : vector<1x256xf32> to vector<8x256xf32>
    %40 = arith.subf %39, %38 : vector<8x256xf32>
    %41 = math.absf %40 : vector<8x256xf32>
    %cst_11 = arith.constant 1.000000e+00 : f32
    %42 = vector.broadcast %cst_11 : f32 to vector<8x256xf32>
    %43 = arith.subf %42, %41 : vector<8x256xf32>
    %cst_12 = arith.constant 0.000000e+00 : f32
    %44 = vector.broadcast %cst_12 : f32 to vector<8x256xf32>
    %45 = arith.maximumf %44, %43 : vector<8x256xf32>
    %46 = vector.extract_strided_slice %16 {offsets = [0, 8, 0], sizes = [4, 8, 256], strides = [1, 1, 1]} : vector<4x16x256xf32> to vector<4x8x256xf32>
    %47 = vector.shape_cast %45 : vector<8x256xf32> to vector<1x8x256xf32>
    %48 = vector.broadcast %47 : vector<1x8x256xf32> to vector<4x8x256xf32>
    %49 = arith.mulf %46, %48 : vector<4x8x256xf32>
    %cst_13 = arith.constant dense<0.000000e+00> : vector<4x256xf32>
    %50 = vector.multi_reduction <add>, %49, %cst_13 [1] : vector<4x8x256xf32> to vector<4x256xf32>
    %51 = arith.addf %34, %50 : vector<4x256xf32>
    %c0_14 = arith.constant 0 : index
    %c0_15 = arith.constant 0 : index
    %c0_16 = arith.constant 0 : index
    %52 = vector.load %arg5[%c0_14, %c0_15, %c0_16] : memref<1x4x256xf32, #tpu.memory_space<vmem>>, vector<1x4x256xf32>
    %53 = vector.shape_cast %52 : vector<1x4x256xf32> to vector<4x256xf32>
    %54 = vector.shape_cast %51 : vector<4x256xf32> to vector<1x4x256xf32>
    tpu.vector_store %arg5[%c0_14, %c0_15, %c0_16], %54 {strides = array<i32>} : memref<1x4x256xf32, #tpu.memory_space<vmem>>, vector<1x4x256xf32>,
    return
  }
  func.func @transform_0(%arg0: i32, %arg1: i32, %arg2: i32) -> (i32, i32, i32) {
    %c0_i32 = arith.constant 0 : i32
    %c0_i32_0 = arith.constant 0 : i32
    return %arg0, %arg1, %c0_i32 : i32, i32, i32
  }
  func.func @transform_1(%arg0: i32, %arg1: i32, %arg2: i32) -> (i32, i32, i32) {
    %c0_i32 = arith.constant 0 : i32
    %c0_i32_0 = arith.constant 0 : i32
    return %arg0, %c0_i32, %arg2 : i32, i32, i32
  }
  func.func @transform_2(%arg0: i32, %arg1: i32, %arg2: i32) -> (i32, i32, i32) {
    %c0_i32 = arith.constant 0 : i32
    return %arg0, %arg1, %arg2 : i32, i32, i32
  }
}

</mosaic_0001>

<bundles_post_ra>
// kernel: tpu_custom_call.1
= control target key start
LH: loop header
LB: loop body
LE: loop exit
PB: predicated region body
PF: predicated region fallthrough
CT: control target
= control target key end

     0   :  { %7 = vsyncpa [#allocation3], 0  ;;  %s1018_s0 = inlined_call_operand.vmem [shape: f32[2,64,16], index: 0, kind: input, shape index: {}]   ;;  %s1019_s1 = inlined_call_operand.vmem [shape: f32[2,2,256], index: 1, kind: input, shape index: {}]   ;;  %s1020_s2 = inlined_call_operand.hbm [shape: f32[2,4,256], index: 2, kind: output, shape index: {}]  }
   0x1   :  { %9 = vsyncpa [#allocation3 + $0x1], 0  ;;  %s857_s9 = smov 0   ;;  %s859_s10 = smov 0  }
   0x2   :  { %s861_s11 = smov 0   ;;  %s863_s12 = smov 0  }
   0x3   :  { %s865_s13 = smov 0   ;;  %s867_s14 = smov 0  }
   0x4 LB: > { %s669_s15 = sadd.s32 4294967295, %s840_s14   ;;  %s670_s16 = sadd.s32 4294967294, %s840_s14   ;;  %s840_s14 = sphi %s867_s14, %s15_s14   ;;  %s836_s13 = sphi %s865_s13, %s1027_s13   ;;  %s832_s12 = sphi %s863_s12, %s1026_s12   ;;  %s828_s11 = sphi %s861_s11, %s1025_s11   ;;  %s824_s10 = sphi %s859_s10, %s1024_s10   ;;  %s820_s9 = sphi %s857_s9, %s1023_s9  }
   0x5   : > { %s34_s17 = sadd.s32 1, %s836_s13  ;;  %s101_s18 = sadd.s32 1, %s828_s11 }
   0x6   : > { %p36_p0 = scmp.ge.s32.totalorder %s34_s17, 2  ;;  %p111_p1 = scmp.ne.s32.totalorder %s828_s11, %s824_s10 }
   0x7   : > { %p112_p2 = scmp.eq.s32.totalorder %s669_s15, 1  ;;  %p117_p3 = scmp.ne.s32.totalorder %s824_s10, %s820_s9 }
   0x8   : > { %s1029_s17 = smov (%p36_p0, %s34_s17), 0  ;;  %p118_p5 = scmp.eq.s32.totalorder %s670_s16, 1 }
   0x9   : > { %p897_p4 = por %p112_p2, %p111_p1  ;;  %s94_s20 = ssub.s32 %s836_s13, %s1029_s17 }
   0xa   : > { %p673_p6 = scmp.ge.s32.totalorder %s840_s14, 1  ;;  %p99_p7 = scmp.eq.s32.totalorder %s94_s20, 0 }
   0xb   : > { %p904_p8 = por %p118_p5, %p117_p3  ;;  %p162_p9 = scmp.lt.s32.totalorder %s840_s14, 3 }
   0xc   : > { %s910_s22 = scalar_select %p99_p7, %s828_s11, %s101_s18  }
   0xd   : > { %p163_p10 = pnand %p673_p6, %p162_p9 }
   0xe   : > { %p198_p11 = scmp.lt.s32.totalorder (!%p163_p10), %s832_s12, 1  ;;  %s194_s4 = sand.u32 (!%p163_p10), 1, %s824_s10  }
   0xf   : > { %166 = sbr.rel (%p163_p10) target bundleno = 224 (0xe0), region = 28  ;;  %s973_s5 = sshll.u32 (!%p163_p10), %s194_s4, 3 }
  0x10   : > { %s702_s6 = sshll.u32 (!%p163_p10), %s832_s12, 3  ;;  %s547_s20 = scalar_lea.sflag (!%p163_p10), [#allocation3], %s194_s4 }
  0x11   : > { %s562_s15 = scalar_lea.hbm (!%p163_p10), %s1020_s2, %s702_s6 }
  0x12   : > { %s566_s18 = sshll.u32 (!%p163_p10), %s562_s15, 4  ;;  %s567_s18 = int_to_ptr.hbm [resolvable:$true] %s566_s18 }
  0x14   : > { %v219_v0 = vlaneseq  ;;  %s199_s23 = scalar_select %p198_p11, %s832_s12, 1  ;;  %vm255_vm0 = vcmask 130048   ;;  %vm524_vm1 = vcmask 1043456   ;;  %vm530_vm2 = vcmask 1041409  }
  0x15   : > { %vm532_vm3 = vcmask 1045509   ;;  %vm535_vm4 = vcmask 1042434   ;;  %vm537_vm5 = vcmask 1046534   ;;  %vm540_vm6 = vcmask 1043459   ;;  %s196_s12 = scalar_lea.vmem [#allocation2], %s973_s5 }
  0x16   : > { %v220_v1 = vshrl.u32 %v219_v0, 7  ;;  %s701_s24 = sshll.u32 %s199_s23, 2  ;;  %s700_s28 = sshll.u32 %s199_s23, 6  ;;  %vm542_vm7 = vcmask 1047559  }
  0x17   : > { %s215_s27 = scalar_lea.vmem %s1019_s1, %s701_s24  ;;  %s924_s3 = scalar_lea.vmem %s1018_s0, %s700_s28 }
  0x18   : > { %v221_v2 = vadd.s32 8, %v220_v1  ;;  %v218_v3 = vld [vmem:[%s215_s27] sm:$0xf]  ;;  %v222_v7 = vcvt.s32.f32 %v220_v1  ;;  %v248_v28 = vld [vmem:[%s924_s3 + $0x8] sm:$0xff]  ;;  %v249_v30 = vld [vmem:[%s924_s3 + $0x10] sm:$0xff]  ;;  %s564_s16 = sshll.u32 %s196_s12, 4  ;;  %s565_s16 = int_to_ptr.vmem [resolvable:$true] %s564_s16 }
  0x19   : > { %v225_v5 = vperm.slane %v218_v3, 0  ;;  %v226_v6 = vperm.slane %v218_v3, 2  ;;  %v247_v26 = vld [vmem:[%s924_s3] sm:$0xff]  ;;  %v252_v29 = vld [vmem:[%s924_s3 + $0x28] sm:$0xff]  ;;  %v253_v31 = vld [vmem:[%s924_s3 + $0x30] sm:$0xff]  ;;  %v363_v34 = vperm.slane %v218_v3, 3 }
  0x1a   : > { %v917_v4 = vcvt.s32.f32 %v221_v2  ;;  %v251_v27 = vld [vmem:[%s924_s3 + $0x20] sm:$0xff]  ;;  %v250_v32 = vld [vmem:[%s924_s3 + $0x18] sm:$0xff]  ;;  %v362_v35 = vperm.slane %v218_v3, 1  ;;  %s776_s23 = sshra.s32 %s567_s18, 4  ;;  %s782_s27 = scalar_lea.hbm %s1020_s2, 16  ;;  %s777_s23 = int_to_ptr.hbm [resolvable:$true] %s776_s23 }
  0x1b   : > { %v229_v8 = vperm.slane %v225_v5, 0  ;;  %v230_v9 = vperm.slane %v226_v6, 0  ;;  %v254_v33 = vld [vmem:[%s924_s3 + $0x38] sm:$0xff]  ;;  %v367_v36 = vperm.slane %v363_v34, 1  ;;  %s778_s24 = scalar_lea.hbm %s777_s23, 8  ;;  %p783_p1 = scmp.lt.s32.totalorder %s777_s23, %s1020_s2 }
  0x1c   : > { %v366_v37 = vperm.slane %v362_v35, 1  ;;  %p779_p12 = scmp.ne.s32.totalorder %s777_s23, %s778_s24  ;;  %p784_p2 = scmp.lt.s32.totalorder %s782_s27, %s778_s24 }
  0x1d   : > { %v233_v10 = vsub.f32 %v229_v8, %v917_v4  ;;  %v234_v11 = vsub.f32 %v230_v9, %v917_v4  ;;  %v231_v12 = vsub.f32 %v229_v8, %v222_v7  ;;  %v232_v13 = vsub.f32 %v230_v9, %v222_v7 }
  0x1e   : > { %v369_v38 = vsub.f32 %v367_v36, %v222_v7  ;;  %v368_v39 = vsub.f32 %v366_v37, %v222_v7  ;;  %v441_v41 = vsub.f32 %v367_v36, %v917_v4  ;;  %v440_v48 = vsub.f32 %v366_v37, %v917_v4  ;;  %p780_p13 = pnand %p779_p12, %p897_p4  ;;  %p785_p3 = por %p784_p2, %p783_p1 }
  0x1f   : > { %v237_v14 = vand.u32 2147483647, %v233_v10  ;;  %v238_v15 = vand.u32 2147483647, %v234_v11  ;;  %v235_v16 = vand.u32 2147483647, %v231_v12 }
  0x20   : > { %v236_v17 = vand.u32 2147483647, %v232_v13  ;;  %v371_v40 = vand.u32 2147483647, %v369_v38  ;;  %v370_v42 = vand.u32 2147483647, %v368_v39  ;;  %p781_p0 = pneg %p780_p13 }
  0x21   : > { %v241_v18 = vsub.f32 1.0, %v237_v14  ;;  %v242_v19 = vsub.f32 1.0, %v238_v15  ;;  %v239_v20 = vsub.f32 1.0, %v235_v16  ;;  %v443_v44 = vand.u32 2147483647, %v441_v41 }
  0x22   : > { %v240_v21 = vsub.f32 1.0, %v236_v17  ;;  %v373_v43 = vsub.f32 1.0, %v371_v40  ;;  %v372_v45 = vsub.f32 1.0, %v370_v42  ;;  %v442_v53 = vand.u32 2147483647, %v440_v48  ;;  %p786_p5 = pnand %p785_p3, %p781_p0 }
  0x23   : > { %v245_v22 = vmax.f32 %v241_v18, 0.0  ;;  %v246_v23 = vmax.f32 %v242_v19, 0.0  ;;  %v243_v24 = vmax.f32 %v239_v20, 0.0  ;;  %v445_v50 = vsub.f32 1.0, %v443_v44 }
  0x24   : > { %v244_v25 = vmax.f32 %v240_v21, 0.0  ;;  %v375_v46 = vmax.f32 %v373_v43, 0.0  ;;  %v374_v51 = vmax.f32 %v372_v45, 0.0  ;;  %v444_v60 = vsub.f32 1.0, %v442_v53 }
  0x25   : > { %294 = vmatpush.msra.mxu0 %v245_v22  ;;  %703 = vmatpush.msra.mxu2 %v245_v22  ;;  %v952_v55 = vmax.f32 %v445_v50, 0.0 }
  0x26   : > { %335 = vmatpush.msra.mxu1 %v246_v23  ;;  %705 = vmatpush.msra.mxu3 %v246_v23  ;;  %v955_v2 = vmax.f32 %v444_v60, 0.0 }
  0x27   : > { %295 = vmatpush.msra.mxu0 %v243_v24  ;;  %704 = vmatpush.msra.mxu2 %v243_v24 }
  0x28   : > { %336 = vmatpush.msra.mxu1 %v244_v25  ;;  %706 = vmatpush.msra.mxu3 %v244_v25 }
  0x29   : > { %679 = vmatmul.msk.f32.vlgmr.msra.gmra.mxu0 %vm255_vm0, %v247_v26  ;;  %683 = vmatmul.msk.f32.vlgmr.msra.gmra.mxu2 %vm255_vm0, %v251_v27 }
  0x2a   : > { %687 = vmatmul.msk.f32.vlgmr.msra.gmra.mxu1 %vm255_vm0, %v247_v26  ;;  %691 = vmatmul.msk.f32.vlgmr.msra.gmra.mxu3 %vm255_vm0, %v251_v27 }
  0x31   : > { %680 = vmatmul.msk.f32.gmra.mxu0 %vm255_vm0, %v248_v28  ;;  %684 = vmatmul.msk.f32.gmra.mxu2 %vm255_vm0, %v252_v29 }
  0x32   : > { %688 = vmatmul.msk.f32.gmra.mxu1 %vm255_vm0, %v248_v28  ;;  %692 = vmatmul.msk.f32.gmra.mxu3 %vm255_vm0, %v252_v29 }
  0x39   : > { %681 = vmatmul.msk.f32.gmra.mxu0 %vm255_vm0, %v249_v30  ;;  %685 = vmatmul.msk.f32.gmra.mxu2 %vm255_vm0, %v253_v31 }
  0x3a   : > { %689 = vmatmul.msk.f32.gmra.mxu1 %vm255_vm0, %v249_v30  ;;  %693 = vmatmul.msk.f32.gmra.mxu3 %vm255_vm0, %v253_v31 }
  0x41   : > { %682 = vmatmul.msk.f32.gmra.mxu0 %vm255_vm0, %v250_v32  ;;  %686 = vmatmul.msk.f32.gmra.mxu2 %vm255_vm0, %v254_v33 }
  0x42   : > { %690 = vmatmul.msk.f32.gmra.mxu1 %vm255_vm0, %v250_v32  ;;  %694 = vmatmul.msk.f32.gmra.mxu3 %vm255_vm0, %v254_v33 }
  0xa6   : > { %v297_v47 = vpop.f32.mrf.mxu0 }
  0xa7   : > { %v338_v49 = vpop.f32.mrf.mxu1  ;;  %v376_v56 = vmul.f32 %v374_v51, %v297_v47 }
  0xa8   : > { %v377_v52 = vmul.f32 %v375_v46, %v338_v49 }
  0xa9   : > { %v384_v0 = vrot.slane %v376_v56, 4 }
  0xaa   : > { %v390_v57 = vrot.slane %v377_v52, 4 }
  0xab   : > { %v385_v7 = vadd.f32 %v384_v0, %v376_v56 }
  0xac   : > { %v309_v54 = vpop.f32.mrf.mxu2  ;;  %v391_v1 = vadd.f32 %v390_v57, %v377_v52 }
  0xad   : > { %v350_v58 = vpop.f32.mrf.mxu3  ;;  %v380_v3 = vmul.f32 %v374_v51, %v309_v54  ;;  %v386_v21 = vrot.slane %v385_v7, 2 }
  0xae   : > { %v300_v59 = vpop.f32.mrf.mxu0  ;;  %v381_v61 = vmul.f32 %v375_v46, %v350_v58  ;;  %v392_v8 = vrot.slane %v391_v1, 2 }
  0xaf   : > { %v341_v62 = vpop.f32.mrf.mxu1  ;;  %v448_v11 = vmul.f32 %v955_v2, %v300_v59  ;;  %v408_v14 = vrot.slane %v380_v3, 4  ;;  %v960_v33 = vadd.f32 %v386_v21, %v385_v7 }
  0xb0   : > { %v449_v63 = vmul.f32 %v952_v55, %v341_v62  ;;  %v414_v4 = vrot.slane %v381_v61, 4  ;;  %v393_v22 = vadd.f32 %v392_v8, %v391_v1 }
  0xb1   : > { %v456_v24 = vrot.slane %v448_v11, 4  ;;  %v409_v27 = vadd.f32 %v408_v14, %v380_v3  ;;  %v388_v53 = vrot.slane %v960_v33, 1 }
  0xb2   : > { %v462_v5 = vrot.slane %v449_v63, 4  ;;  %v415_v15 = vadd.f32 %v414_v4, %v381_v61  ;;  %v394_v34 = vrot.slane %v393_v22, 1 }
  0xb3   : > { %v457_v38 = vadd.f32 %v456_v24, %v448_v11  ;;  %v410_v42 = vrot.slane %v409_v27, 2 }
  0xb4   : > { %v312_v6 = vpop.f32.mrf.mxu2  ;;  %v463_v18 = vadd.f32 %v462_v5, %v449_v63  ;;  %v416_v28 = vrot.slane %v415_v15, 2  ;;  %v395_v54 = vadd.f32 %v394_v34, %v393_v22 }
  0xb5   : > { %v452_v9 = vmul.f32 %v955_v2, %v312_v6  ;;  %v353_v10 = vpop.f32.mrf.mxu3  ;;  %v458_v57 = vrot.slane %v457_v38, 2  ;;  %v411_v60 = vadd.f32 %v410_v42, %v409_v27 }
  0xb6   : > { %v453_v12 = vmul.f32 %v952_v55, %v353_v10  ;;  %v303_v13 = vpop.f32.mrf.mxu0  ;;  %v464_v30 = vrot.slane %v463_v18, 2  ;;  %v417_v43 = vadd.f32 %v416_v28, %v415_v15 }
  0xb7   : > { %v378_v16 = vmul.f32 %v374_v51, %v303_v13  ;;  %v344_v17 = vpop.f32.mrf.mxu1  ;;  %v480_v23 = vrot.slane %v452_v9, 4  ;;  %v459_v11 = vadd.f32 %v458_v57, %v457_v38 }
  0xb8   : > { %v486_v19 = vrot.slane %v453_v12, 4  ;;  %v379_v20 = vmul.f32 %v375_v46, %v344_v17  ;;  %v465_v48 = vadd.f32 %v464_v30, %v463_v18  ;;  %v418_v61 = vrot.slane %v417_v43, 1 }
  0xb9   : > { %v396_v29 = vrot.slane %v378_v16, 4  ;;  %v481_v35 = vadd.f32 %v480_v23, %v452_v9  ;;  %v412_v30 = vrot.slane %v411_v60, 1 }
  0xba   : > { %v487_v25 = vadd.f32 %v486_v19, %v453_v12  ;;  %v402_v26 = vrot.slane %v379_v20, 4  ;;  %v466_v0 = vrot.slane %v465_v48, 1  ;;  %v419_v15 = vadd.f32 %v418_v61, %v417_v43 }
  0xbb   : > { %v397_v44 = vadd.f32 %v396_v29, %v378_v16  ;;  %v482_v56 = vrot.slane %v481_v35, 2 }
  0xbc   : > { %v488_v31 = vrot.slane %v487_v25, 2  ;;  %v315_v32 = vpop.f32.mrf.mxu2  ;;  %v403_v39 = vadd.f32 %v402_v26, %v379_v20  ;;  %v467_v23 = vadd.f32 %v466_v0, %v465_v48 }
  0xbd   : > { %v382_v36 = vmul.f32 %v374_v51, %v315_v32  ;;  %v356_v37 = vpop.f32.mrf.mxu3  ;;  %v398_v62 = vrot.slane %v397_v44, 2  ;;  %v483_v6 = vadd.f32 %v482_v56, %v481_v35 }
  0xbe   : > { %v383_v40 = vmul.f32 %v375_v46, %v356_v37  ;;  %v306_v41 = vpop.f32.mrf.mxu0  ;;  %v489_v49 = vadd.f32 %v488_v31, %v487_v25  ;;  %v404_v58 = vrot.slane %v403_v39, 2  ;;  %v460_v31 = vrot.slane %v459_v11, 1 }
  0xbf   : > { %v450_v45 = vmul.f32 %v955_v2, %v306_v41  ;;  %v347_v47 = vpop.f32.mrf.mxu1  ;;  %v420_v50 = vrot.slane %v382_v36, 4  ;;  %v399_v16 = vadd.f32 %v398_v62, %v397_v44  ;;  %v484_v24 = vrot.slane %v483_v6, 1 }
  0xc0   : > { %v426_v52 = vrot.slane %v383_v40, 4  ;;  %v451_v46 = vmul.f32 %v952_v55, %v347_v47  ;;  %v490_v1 = vrot.slane %v489_v49, 1  ;;  %v405_v12 = vadd.f32 %v404_v58, %v403_v39 }
  0xc1   : > { %v468_v51 = vrot.slane %v450_v45, 4  ;;  %v421_v3 = vadd.f32 %v420_v50, %v382_v36  ;;  %v400_v32 = vrot.slane %v399_v16, 1  ;;  %v505_v38 = vadd.f32 %v467_v23, %v395_v54 }
  0xc2   : > { %v427_v59 = vadd.f32 %v426_v52, %v383_v40  ;;  %v474_v4 = vrot.slane %v451_v46, 4  ;;  %v491_v19 = vadd.f32 %v490_v1, %v489_v49  ;;  %v406_v27 = vrot.slane %v405_v12, 1 }
  0xc3   : > { %v469_v63 = vadd.f32 %v468_v51, %v450_v45  ;;  %v422_v20 = vrot.slane %v421_v3, 2  ;;  %v485_v39 = vadd.f32 %v484_v24, %v483_v6  ;;  %v413_v47 = vadd.f32 %v412_v30, %v411_v60 }
  0xc4   : > { %v318_v5 = vpop.f32.mrf.mxu2  ;;  %v428_v7 = vrot.slane %v427_v59, 2  ;;  %v475_v13 = vadd.f32 %v474_v4, %v451_v46  ;;  %v509_v34 = vadd.f32 %v491_v19, %v419_v15  ;;  %v407_v42 = vadd.f32 %v406_v27, %v405_v12 }
  0xc5   : > { %v470_v8 = vrot.slane %v469_v63, 2  ;;  %v454_v9 = vmul.f32 %v955_v2, %v318_v5  ;;  %v359_v10 = vpop.f32.mrf.mxu3  ;;  %v423_v35 = vadd.f32 %v422_v20, %v421_v3  ;;  %v461_v48 = vadd.f32 %v460_v31, %v459_v11 }
  0xc6   : > { %v455_v14 = vmul.f32 %v952_v55, %v359_v10  ;;  %v476_v21 = vrot.slane %v475_v13, 2  ;;  %v429_v25 = vadd.f32 %v428_v7, %v427_v59  ;;  %v401_v49 = vadd.f32 %v400_v32, %v399_v16 }
  0xc7   : > { %v471_v17 = vadd.f32 %v470_v8, %v469_v63  ;;  %v492_v18 = vrot.slane %v454_v9, 4  ;;  %v522_v52 = vrot.slane %v509_v34, 4  ;;  %v424_v56 = vrot.slane %v423_v35, 1 }
  0xc8   : > { %v498_v22 = vrot.slane %v455_v14, 4  ;;  %v477_v28 = vadd.f32 %v476_v21, %v475_v13  ;;  %v430_v40 = vrot.slane %v429_v25, 1  ;;  %v389_v54 = vadd.f32 %v388_v53, %v960_v33 }
  0xc9   : > { %v493_v26 = vadd.f32 %v492_v18, %v454_v9  ;;  %v472_v2 = vrot.slane %v471_v17, 1  ;;  %v520_v58 = vrot.slane %v505_v38, 4  ;;  %v508_v59 = vadd.f32 %v485_v39, %v413_v47 }
  0xca   : > { %v499_v29 = vadd.f32 %v498_v22, %v455_v14  ;;  %v478_v36 = vrot.slane %v477_v28, 1  ;;  %v431_v46 = vadd.f32 %v430_v40, %v429_v25  ;;  %v504_v0 = vadd.f32 %v461_v48, %v389_v54 }
  0xcb   : > { %v494_v55 = vrot.slane %v493_v26, 2  ;;  %v473_v43 = vadd.f32 %v472_v2, %v471_v17  ;;  %v425_v1 = vadd.f32 %v424_v56, %v423_v35  ;;  %v527_v33 = vsel %vm524_vm1, %v508_v59, %v522_v52 }
  0xcc   : > { %v500_v37 = vrot.slane %v499_v29, 2  ;;  %v479_v44 = vadd.f32 %v478_v36, %v477_v28  ;;  %v525_v7 = vsel %vm524_vm1, %v504_v0, %v520_v58  ;;  %v534_v9 = vrot.slane %v527_v33, 6 }
  0xcd   : > { %v495_v41 = vadd.f32 %v494_v55, %v493_v26  ;;  %v506_v61 = vadd.f32 %v473_v43, %v401_v49 }
  0xce   : > { %v501_v45 = vadd.f32 %v500_v37, %v499_v29  ;;  %v507_v51 = vadd.f32 %v479_v44, %v407_v42 }
  0xcf   : > { %v496_v50 = vrot.slane %v495_v41, 1 }
  0xd0   : > { %v502_v57 = vrot.slane %v501_v45, 1  ;;  %v521_v62 = vrot.slane %v507_v51, 4 }
  0xd1   : > { %v497_v60 = vadd.f32 %v496_v50, %v495_v41 }
  0xd2   : > { %v503_v63 = vadd.f32 %v502_v57, %v501_v45  ;;  %v526_v4 = vsel %vm524_vm1, %v506_v61, %v521_v62 }
  0xd3   : > { %v529_v53 = vrot.slane %v526_v4, 7  ;;  %v510_v5 = vadd.f32 %v497_v60, %v425_v1 }
  0xd4   : > { %v511_v3 = vadd.f32 %v503_v63, %v431_v46 }
  0xd5   : > { %v531_v8 = vsel %vm530_vm2, %v529_v53, %v525_v7 }
  0xd6   : > { %v523_v6 = vrot.slane %v511_v3, 4  ;;  %v533_v11 = vsel %vm532_vm3, %v529_v53, %v531_v8 }
  0xd7   : > { %v536_v12 = vsel %vm535_vm4, %v534_v9, %v533_v11 }
  0xd8   : > { %v528_v10 = vsel %vm524_vm1, %v510_v5, %v523_v6  ;;  %v538_v14 = vsel %vm537_vm5, %v534_v9, %v536_v12 }
  0xd9   : > { %v539_v13 = vrot.slane %v528_v10, 5 }
  0xdb   : > { %v541_v15 = vsel %vm540_vm6, %v539_v13, %v538_v14 }
  0xdc   : > { %v543_v16 = vsel %vm542_vm7, %v539_v13, %v541_v15 }
  0xdd   : > { %545 = vst [vmem:[%s196_s12] sm:$0xff] %v543_v16 }
  0xde   : > { %789 = shalt.err (!%p786_p5)
}
  0xdf   : > { %707 = dma.vmem_to_hbm [thread:$0]  (%p897_p4), %s565_s16, 128, %s567_s18, %s547_s20  }
  0xe0 PF: > { %p713_p6 = scmp.ge.s32.totalorder %s840_s14, 2  ;;  %s578_s30 = sand.u32 1, %s820_s9  }
  0xe1   : > { %s579_s3 = scalar_lea.sflag [#allocation3], %s578_s30 }
  0xe2   : > { %p710_p7 = pnand %p713_p6, %p904_p8 }
  0xe4   : > { %p711_p9 = pneg %p710_p7 }
  0xe6   : > { %815 = dma.done.wait (%p711_p9), %s579_s3, 128  }
  0xe7   : > { %817 = vsyncadd (%p711_p9), %s579_s3, 4294967168  ;;  %s15_s14 = sadd.s32 1, %s840_s14   ;;  %s1023_s9 = smov %s824_s10 }
  0xe8   : > { %p12_p10 = scmp.ge.s32.totalorder %s15_s14, 4   ;;  %s1024_s10 = smov %s828_s11 }
  0xe9   : > { %s1025_s11 = smov %s910_s22  ;;  %s1026_s12 = smov %s836_s13 }
  0xea   : > { %s1027_s13 = smov %s1029_s17  ;;  %14 = sbr.rel (!%p12_p10) target bundleno = 4 (0x4), region = 66 }
  0xef   :  { %585 = vsyncpa [#allocation3], 1 }
  0xf0   :  { %587 = vsyncpa [#allocation3 + $0x1], 1 }

// kernel: tpu_custom_call.1
= control target key start
LH: loop header
LB: loop body
LE: loop exit
PB: predicated region body
PF: predicated region fallthrough
CT: control target
= control target key end

     0   :  { %7 = vsyncpa [#allocation3], 0  ;;  %s1015_s0 = inlined_call_operand.vmem [shape: f32[2,64,16], index: 0, kind: input, shape index: {}]   ;;  %s1016_s1 = inlined_call_operand.vmem [shape: f32[2,2,256], index: 1, kind: input, shape index: {}]   ;;  %s1017_s2 = inlined_call_operand.hbm [shape: f32[2,4,256], index: 2, kind: output, shape index: {}]  }
   0x1   :  { %9 = vsyncpa [#allocation3 + $0x1], 0  ;;  %s854_s9 = smov 0   ;;  %s856_s10 = smov 0  }
   0x2   :  { %s858_s11 = smov 0   ;;  %s860_s12 = smov 0  }
   0x3   :  { %s862_s13 = smov 0   ;;  %s864_s14 = smov 0  }
   0x4 LB: > { %s666_s15 = sadd.s32 4294967295, %s837_s14   ;;  %s667_s16 = sadd.s32 4294967294, %s837_s14   ;;  %s837_s14 = sphi %s864_s14, %s15_s14   ;;  %s833_s13 = sphi %s862_s13, %s1024_s13   ;;  %s829_s12 = sphi %s860_s12, %s1023_s12   ;;  %s825_s11 = sphi %s858_s11, %s1022_s11   ;;  %s821_s10 = sphi %s856_s10, %s1021_s10   ;;  %s817_s9 = sphi %s854_s9, %s1020_s9  }
   0x5   : > { %s34_s17 = sadd.s32 1, %s833_s13  ;;  %s101_s18 = sadd.s32 1, %s825_s11 }
   0x6   : > { %p36_p0 = scmp.ge.s32.totalorder %s34_s17, 2  ;;  %p111_p1 = scmp.ne.s32.totalorder %s825_s11, %s821_s10 }
   0x7   : > { %p112_p2 = scmp.eq.s32.totalorder %s666_s15, 1  ;;  %p117_p3 = scmp.ne.s32.totalorder %s821_s10, %s817_s9 }
   0x8   : > { %s1026_s17 = smov (%p36_p0, %s34_s17), 0  ;;  %p118_p5 = scmp.eq.s32.totalorder %s667_s16, 1 }
   0x9   : > { %p894_p4 = por %p112_p2, %p111_p1  ;;  %s94_s20 = ssub.s32 %s833_s13, %s1026_s17 }
   0xa   : > { %p670_p6 = scmp.ge.s32.totalorder %s837_s14, 1  ;;  %p99_p7 = scmp.eq.s32.totalorder %s94_s20, 0 }
   0xb   : > { %p901_p8 = por %p118_p5, %p117_p3  ;;  %p162_p9 = scmp.lt.s32.totalorder %s837_s14, 3 }
   0xc   : > { %s907_s22 = scalar_select %p99_p7, %s825_s11, %s101_s18  }
   0xd   : > { %p163_p10 = pnand %p670_p6, %p162_p9 }
   0xe   : > { %p198_p11 = scmp.lt.s32.totalorder (!%p163_p10), %s829_s12, 1  ;;  %s194_s4 = sand.u32 (!%p163_p10), 1, %s821_s10  }
   0xf   : > { %166 = sbr.rel (%p163_p10) target bundleno = 224 (0xe0), region = 28  ;;  %s970_s5 = sshll.u32 (!%p163_p10), %s194_s4, 3 }
  0x10   : > { %s699_s6 = sshll.u32 (!%p163_p10), %s829_s12, 3  ;;  %s547_s20 = scalar_lea.sflag (!%p163_p10), [#allocation3], %s194_s4 }
  0x11   : > { %s562_s15 = scalar_lea.hbm (!%p163_p10), %s1017_s2, %s699_s6 }
  0x12   : > { %s566_s18 = sshll.u32 (!%p163_p10), %s562_s15, 4  ;;  %s567_s18 = int_to_ptr.hbm [resolvable:$true] %s566_s18 }
  0x14   : > { %v219_v0 = vlaneseq  ;;  %s199_s23 = scalar_select %p198_p11, %s829_s12, 1  ;;  %vm255_vm0 = vcmask 130048   ;;  %vm524_vm1 = vcmask 1043456   ;;  %vm530_vm2 = vcmask 1041409  }
  0x15   : > { %vm532_vm3 = vcmask 1045509   ;;  %vm535_vm4 = vcmask 1042434   ;;  %vm537_vm5 = vcmask 1046534   ;;  %vm540_vm6 = vcmask 1043459   ;;  %s196_s12 = scalar_lea.vmem [#allocation2], %s970_s5 }
  0x16   : > { %v220_v1 = vshrl.u32 %v219_v0, 7  ;;  %s698_s24 = sshll.u32 %s199_s23, 2  ;;  %s697_s28 = sshll.u32 %s199_s23, 6  ;;  %vm542_vm7 = vcmask 1047559  }
  0x17   : > { %s215_s27 = scalar_lea.vmem %s1016_s1, %s698_s24  ;;  %s921_s3 = scalar_lea.vmem %s1015_s0, %s697_s28 }
  0x18   : > { %v221_v2 = vadd.s32 8, %v220_v1  ;;  %v218_v3 = vld [vmem:[%s215_s27] sm:$0xf]  ;;  %v222_v7 = vcvt.s32.f32 %v220_v1  ;;  %v248_v28 = vld [vmem:[%s921_s3 + $0x8] sm:$0xff]  ;;  %v249_v30 = vld [vmem:[%s921_s3 + $0x10] sm:$0xff]  ;;  %s564_s16 = sshll.u32 %s196_s12, 4  ;;  %s565_s16 = int_to_ptr.vmem [resolvable:$true] %s564_s16 }
  0x19   : > { %v225_v5 = vperm.slane %v218_v3, 0  ;;  %v226_v6 = vperm.slane %v218_v3, 2  ;;  %v247_v26 = vld [vmem:[%s921_s3] sm:$0xff]  ;;  %v252_v29 = vld [vmem:[%s921_s3 + $0x28] sm:$0xff]  ;;  %v253_v31 = vld [vmem:[%s921_s3 + $0x30] sm:$0xff]  ;;  %v363_v34 = vperm.slane %v218_v3, 3 }
  0x1a   : > { %v914_v4 = vcvt.s32.f32 %v221_v2  ;;  %v251_v27 = vld [vmem:[%s921_s3 + $0x20] sm:$0xff]  ;;  %v250_v32 = vld [vmem:[%s921_s3 + $0x18] sm:$0xff]  ;;  %v362_v35 = vperm.slane %v218_v3, 1  ;;  %s773_s23 = sshra.s32 %s567_s18, 4  ;;  %s779_s27 = scalar_lea.hbm %s1017_s2, 16  ;;  %s774_s23 = int_to_ptr.hbm [resolvable:$true] %s773_s23 }
  0x1b   : > { %v229_v8 = vperm.slane %v225_v5, 0  ;;  %v230_v9 = vperm.slane %v226_v6, 0  ;;  %v254_v33 = vld [vmem:[%s921_s3 + $0x38] sm:$0xff]  ;;  %v367_v36 = vperm.slane %v363_v34, 1  ;;  %s775_s24 = scalar_lea.hbm %s774_s23, 8  ;;  %p780_p1 = scmp.lt.s32.totalorder %s774_s23, %s1017_s2 }
  0x1c   : > { %v366_v37 = vperm.slane %v362_v35, 1  ;;  %p776_p12 = scmp.ne.s32.totalorder %s774_s23, %s775_s24  ;;  %p781_p2 = scmp.lt.s32.totalorder %s779_s27, %s775_s24 }
  0x1d   : > { %v233_v10 = vsub.f32 %v229_v8, %v914_v4  ;;  %v234_v11 = vsub.f32 %v230_v9, %v914_v4  ;;  %v231_v12 = vsub.f32 %v229_v8, %v222_v7  ;;  %v232_v13 = vsub.f32 %v230_v9, %v222_v7 }
  0x1e   : > { %v369_v38 = vsub.f32 %v367_v36, %v222_v7  ;;  %v368_v39 = vsub.f32 %v366_v37, %v222_v7  ;;  %v441_v41 = vsub.f32 %v367_v36, %v914_v4  ;;  %v440_v48 = vsub.f32 %v366_v37, %v914_v4  ;;  %p777_p13 = pnand %p776_p12, %p894_p4  ;;  %p782_p3 = por %p781_p2, %p780_p1 }
  0x1f   : > { %v237_v14 = vand.u32 2147483647, %v233_v10  ;;  %v238_v15 = vand.u32 2147483647, %v234_v11  ;;  %v235_v16 = vand.u32 2147483647, %v231_v12 }
  0x20   : > { %v236_v17 = vand.u32 2147483647, %v232_v13  ;;  %v371_v40 = vand.u32 2147483647, %v369_v38  ;;  %v370_v42 = vand.u32 2147483647, %v368_v39  ;;  %p778_p0 = pneg %p777_p13 }
  0x21   : > { %v241_v18 = vsub.f32 1.0, %v237_v14  ;;  %v242_v19 = vsub.f32 1.0, %v238_v15  ;;  %v239_v20 = vsub.f32 1.0, %v235_v16  ;;  %v443_v44 = vand.u32 2147483647, %v441_v41 }
  0x22   : > { %v240_v21 = vsub.f32 1.0, %v236_v17  ;;  %v373_v43 = vsub.f32 1.0, %v371_v40  ;;  %v372_v45 = vsub.f32 1.0, %v370_v42  ;;  %v442_v53 = vand.u32 2147483647, %v440_v48  ;;  %p783_p5 = pnand %p782_p3, %p778_p0 }
  0x23   : > { %v245_v22 = vmax.f32 %v241_v18, 0.0  ;;  %v246_v23 = vmax.f32 %v242_v19, 0.0  ;;  %v243_v24 = vmax.f32 %v239_v20, 0.0  ;;  %v445_v50 = vsub.f32 1.0, %v443_v44 }
  0x24   : > { %v244_v25 = vmax.f32 %v240_v21, 0.0  ;;  %v375_v46 = vmax.f32 %v373_v43, 0.0  ;;  %v374_v51 = vmax.f32 %v372_v45, 0.0  ;;  %v444_v60 = vsub.f32 1.0, %v442_v53 }
  0x25   : > { %294 = vmatpush.msra.mxu0 %v245_v22  ;;  %700 = vmatpush.msra.mxu2 %v245_v22  ;;  %v949_v55 = vmax.f32 %v445_v50, 0.0 }
  0x26   : > { %335 = vmatpush.msra.mxu1 %v246_v23  ;;  %702 = vmatpush.msra.mxu3 %v246_v23  ;;  %v952_v2 = vmax.f32 %v444_v60, 0.0 }
  0x27   : > { %295 = vmatpush.msra.mxu0 %v243_v24  ;;  %701 = vmatpush.msra.mxu2 %v243_v24 }
  0x28   : > { %336 = vmatpush.msra.mxu1 %v244_v25  ;;  %703 = vmatpush.msra.mxu3 %v244_v25 }
  0x29   : > { %676 = vmatmul.msk.f32.vlgmr.msra.gmra.mxu0 %vm255_vm0, %v247_v26  ;;  %680 = vmatmul.msk.f32.vlgmr.msra.gmra.mxu2 %vm255_vm0, %v251_v27 }
  0x2a   : > { %684 = vmatmul.msk.f32.vlgmr.msra.gmra.mxu1 %vm255_vm0, %v247_v26  ;;  %688 = vmatmul.msk.f32.vlgmr.msra.gmra.mxu3 %vm255_vm0, %v251_v27 }
  0x31   : > { %677 = vmatmul.msk.f32.gmra.mxu0 %vm255_vm0, %v248_v28  ;;  %681 = vmatmul.msk.f32.gmra.mxu2 %vm255_vm0, %v252_v29 }
  0x32   : > { %685 = vmatmul.msk.f32.gmra.mxu1 %vm255_vm0, %v248_v28  ;;  %689 = vmatmul.msk.f32.gmra.mxu3 %vm255_vm0, %v252_v29 }
  0x39   : > { %678 = vmatmul.msk.f32.gmra.mxu0 %vm255_vm0, %v249_v30  ;;  %682 = vmatmul.msk.f32.gmra.mxu2 %vm255_vm0, %v253_v31 }
  0x3a   : > { %686 = vmatmul.msk.f32.gmra.mxu1 %vm255_vm0, %v249_v30  ;;  %690 = vmatmul.msk.f32.gmra.mxu3 %vm255_vm0, %v253_v31 }
  0x41   : > { %679 = vmatmul.msk.f32.gmra.mxu0 %vm255_vm0, %v250_v32  ;;  %683 = vmatmul.msk.f32.gmra.mxu2 %vm255_vm0, %v254_v33 }
  0x42   : > { %687 = vmatmul.msk.f32.gmra.mxu1 %vm255_vm0, %v250_v32  ;;  %691 = vmatmul.msk.f32.gmra.mxu3 %vm255_vm0, %v254_v33 }
  0xa6   : > { %v297_v47 = vpop.f32.mrf.mxu0 }
  0xa7   : > { %v338_v49 = vpop.f32.mrf.mxu1  ;;  %v376_v56 = vmul.f32 %v374_v51, %v297_v47 }
  0xa8   : > { %v377_v52 = vmul.f32 %v375_v46, %v338_v49 }
  0xa9   : > { %v384_v0 = vrot.slane %v376_v56, 4 }
  0xaa   : > { %v390_v57 = vrot.slane %v377_v52, 4 }
  0xab   : > { %v385_v7 = vadd.f32 %v384_v0, %v376_v56 }
  0xac   : > { %v309_v54 = vpop.f32.mrf.mxu2  ;;  %v391_v1 = vadd.f32 %v390_v57, %v377_v52 }
  0xad   : > { %v350_v58 = vpop.f32.mrf.mxu3  ;;  %v380_v3 = vmul.f32 %v374_v51, %v309_v54  ;;  %v386_v21 = vrot.slane %v385_v7, 2 }
  0xae   : > { %v300_v59 = vpop.f32.mrf.mxu0  ;;  %v381_v61 = vmul.f32 %v375_v46, %v350_v58  ;;  %v392_v8 = vrot.slane %v391_v1, 2 }
  0xaf   : > { %v341_v62 = vpop.f32.mrf.mxu1  ;;  %v448_v11 = vmul.f32 %v952_v2, %v300_v59  ;;  %v408_v14 = vrot.slane %v380_v3, 4  ;;  %v957_v33 = vadd.f32 %v386_v21, %v385_v7 }
  0xb0   : > { %v449_v63 = vmul.f32 %v949_v55, %v341_v62  ;;  %v414_v4 = vrot.slane %v381_v61, 4  ;;  %v393_v22 = vadd.f32 %v392_v8, %v391_v1 }
  0xb1   : > { %v456_v24 = vrot.slane %v448_v11, 4  ;;  %v409_v27 = vadd.f32 %v408_v14, %v380_v3  ;;  %v388_v53 = vrot.slane %v957_v33, 1 }
  0xb2   : > { %v462_v5 = vrot.slane %v449_v63, 4  ;;  %v415_v15 = vadd.f32 %v414_v4, %v381_v61  ;;  %v394_v34 = vrot.slane %v393_v22, 1 }
  0xb3   : > { %v457_v38 = vadd.f32 %v456_v24, %v448_v11  ;;  %v410_v42 = vrot.slane %v409_v27, 2 }
  0xb4   : > { %v312_v6 = vpop.f32.mrf.mxu2  ;;  %v463_v18 = vadd.f32 %v462_v5, %v449_v63  ;;  %v416_v28 = vrot.slane %v415_v15, 2  ;;  %v395_v54 = vadd.f32 %v394_v34, %v393_v22 }
  0xb5   : > { %v452_v9 = vmul.f32 %v952_v2, %v312_v6  ;;  %v353_v10 = vpop.f32.mrf.mxu3  ;;  %v458_v57 = vrot.slane %v457_v38, 2  ;;  %v411_v60 = vadd.f32 %v410_v42, %v409_v27 }
  0xb6   : > { %v453_v12 = vmul.f32 %v949_v55, %v353_v10  ;;  %v303_v13 = vpop.f32.mrf.mxu0  ;;  %v464_v30 = vrot.slane %v463_v18, 2  ;;  %v417_v43 = vadd.f32 %v416_v28, %v415_v15 }
  0xb7   : > { %v378_v16 = vmul.f32 %v374_v51, %v303_v13  ;;  %v344_v17 = vpop.f32.mrf.mxu1  ;;  %v480_v23 = vrot.slane %v452_v9, 4  ;;  %v459_v11 = vadd.f32 %v458_v57, %v457_v38 }
  0xb8   : > { %v486_v19 = vrot.slane %v453_v12, 4  ;;  %v379_v20 = vmul.f32 %v375_v46, %v344_v17  ;;  %v465_v48 = vadd.f32 %v464_v30, %v463_v18  ;;  %v418_v61 = vrot.slane %v417_v43, 1 }
  0xb9   : > { %v396_v29 = vrot.slane %v378_v16, 4  ;;  %v481_v35 = vadd.f32 %v480_v23, %v452_v9  ;;  %v412_v30 = vrot.slane %v411_v60, 1 }
  0xba   : > { %v487_v25 = vadd.f32 %v486_v19, %v453_v12  ;;  %v402_v26 = vrot.slane %v379_v20, 4  ;;  %v466_v0 = vrot.slane %v465_v48, 1  ;;  %v419_v15 = vadd.f32 %v418_v61, %v417_v43 }
  0xbb   : > { %v397_v44 = vadd.f32 %v396_v29, %v378_v16  ;;  %v482_v56 = vrot.slane %v481_v35, 2 }
  0xbc   : > { %v488_v31 = vrot.slane %v487_v25, 2  ;;  %v315_v32 = vpop.f32.mrf.mxu2  ;;  %v403_v39 = vadd.f32 %v402_v26, %v379_v20  ;;  %v467_v23 = vadd.f32 %v466_v0, %v465_v48 }
  0xbd   : > { %v382_v36 = vmul.f32 %v374_v51, %v315_v32  ;;  %v356_v37 = vpop.f32.mrf.mxu3  ;;  %v398_v62 = vrot.slane %v397_v44, 2  ;;  %v483_v6 = vadd.f32 %v482_v56, %v481_v35 }
  0xbe   : > { %v383_v40 = vmul.f32 %v375_v46, %v356_v37  ;;  %v306_v41 = vpop.f32.mrf.mxu0  ;;  %v489_v49 = vadd.f32 %v488_v31, %v487_v25  ;;  %v404_v58 = vrot.slane %v403_v39, 2  ;;  %v460_v31 = vrot.slane %v459_v11, 1 }
  0xbf   : > { %v450_v45 = vmul.f32 %v952_v2, %v306_v41  ;;  %v347_v47 = vpop.f32.mrf.mxu1  ;;  %v420_v50 = vrot.slane %v382_v36, 4  ;;  %v399_v16 = vadd.f32 %v398_v62, %v397_v44  ;;  %v484_v24 = vrot.slane %v483_v6, 1 }
  0xc0   : > { %v426_v52 = vrot.slane %v383_v40, 4  ;;  %v451_v46 = vmul.f32 %v949_v55, %v347_v47  ;;  %v490_v1 = vrot.slane %v489_v49, 1  ;;  %v405_v12 = vadd.f32 %v404_v58, %v403_v39 }
  0xc1   : > { %v468_v51 = vrot.slane %v450_v45, 4  ;;  %v421_v3 = vadd.f32 %v420_v50, %v382_v36  ;;  %v400_v32 = vrot.slane %v399_v16, 1  ;;  %v505_v38 = vadd.f32 %v467_v23, %v395_v54 }
  0xc2   : > { %v427_v59 = vadd.f32 %v426_v52, %v383_v40  ;;  %v474_v4 = vrot.slane %v451_v46, 4  ;;  %v491_v19 = vadd.f32 %v490_v1, %v489_v49  ;;  %v406_v27 = vrot.slane %v405_v12, 1 }
  0xc3   : > { %v469_v63 = vadd.f32 %v468_v51, %v450_v45  ;;  %v422_v20 = vrot.slane %v421_v3, 2  ;;  %v485_v39 = vadd.f32 %v484_v24, %v483_v6  ;;  %v413_v47 = vadd.f32 %v412_v30, %v411_v60 }
  0xc4   : > { %v318_v5 = vpop.f32.mrf.mxu2  ;;  %v428_v7 = vrot.slane %v427_v59, 2  ;;  %v475_v13 = vadd.f32 %v474_v4, %v451_v46  ;;  %v509_v34 = vadd.f32 %v491_v19, %v419_v15  ;;  %v407_v42 = vadd.f32 %v406_v27, %v405_v12 }
  0xc5   : > { %v470_v8 = vrot.slane %v469_v63, 2  ;;  %v454_v9 = vmul.f32 %v952_v2, %v318_v5  ;;  %v359_v10 = vpop.f32.mrf.mxu3  ;;  %v423_v35 = vadd.f32 %v422_v20, %v421_v3  ;;  %v461_v48 = vadd.f32 %v460_v31, %v459_v11 }
  0xc6   : > { %v455_v14 = vmul.f32 %v949_v55, %v359_v10  ;;  %v476_v21 = vrot.slane %v475_v13, 2  ;;  %v429_v25 = vadd.f32 %v428_v7, %v427_v59  ;;  %v401_v49 = vadd.f32 %v400_v32, %v399_v16 }
  0xc7   : > { %v471_v17 = vadd.f32 %v470_v8, %v469_v63  ;;  %v492_v18 = vrot.slane %v454_v9, 4  ;;  %v522_v52 = vrot.slane %v509_v34, 4  ;;  %v424_v56 = vrot.slane %v423_v35, 1 }
  0xc8   : > { %v498_v22 = vrot.slane %v455_v14, 4  ;;  %v477_v28 = vadd.f32 %v476_v21, %v475_v13  ;;  %v430_v40 = vrot.slane %v429_v25, 1  ;;  %v389_v54 = vadd.f32 %v388_v53, %v957_v33 }
  0xc9   : > { %v493_v26 = vadd.f32 %v492_v18, %v454_v9  ;;  %v472_v2 = vrot.slane %v471_v17, 1  ;;  %v520_v58 = vrot.slane %v505_v38, 4  ;;  %v508_v59 = vadd.f32 %v485_v39, %v413_v47 }
  0xca   : > { %v499_v29 = vadd.f32 %v498_v22, %v455_v14  ;;  %v478_v36 = vrot.slane %v477_v28, 1  ;;  %v431_v46 = vadd.f32 %v430_v40, %v429_v25  ;;  %v504_v0 = vadd.f32 %v461_v48, %v389_v54 }
  0xcb   : > { %v494_v55 = vrot.slane %v493_v26, 2  ;;  %v473_v43 = vadd.f32 %v472_v2, %v471_v17  ;;  %v425_v1 = vadd.f32 %v424_v56, %v423_v35  ;;  %v527_v33 = vsel %vm524_vm1, %v508_v59, %v522_v52 }
  0xcc   : > { %v500_v37 = vrot.slane %v499_v29, 2  ;;  %v479_v44 = vadd.f32 %v478_v36, %v477_v28  ;;  %v525_v7 = vsel %vm524_vm1, %v504_v0, %v520_v58  ;;  %v534_v9 = vrot.slane %v527_v33, 6 }
  0xcd   : > { %v495_v41 = vadd.f32 %v494_v55, %v493_v26  ;;  %v506_v61 = vadd.f32 %v473_v43, %v401_v49 }
  0xce   : > { %v501_v45 = vadd.f32 %v500_v37, %v499_v29  ;;  %v507_v51 = vadd.f32 %v479_v44, %v407_v42 }
  0xcf   : > { %v496_v50 = vrot.slane %v495_v41, 1 }
  0xd0   : > { %v502_v57 = vrot.slane %v501_v45, 1  ;;  %v521_v62 = vrot.slane %v507_v51, 4 }
  0xd1   : > { %v497_v60 = vadd.f32 %v496_v50, %v495_v41 }
  0xd2   : > { %v503_v63 = vadd.f32 %v502_v57, %v501_v45  ;;  %v526_v4 = vsel %vm524_vm1, %v506_v61, %v521_v62 }
  0xd3   : > { %v529_v53 = vrot.slane %v526_v4, 7  ;;  %v510_v5 = vadd.f32 %v497_v60, %v425_v1 }
  0xd4   : > { %v511_v3 = vadd.f32 %v503_v63, %v431_v46 }
  0xd5   : > { %v531_v8 = vsel %vm530_vm2, %v529_v53, %v525_v7 }
  0xd6   : > { %v523_v6 = vrot.slane %v511_v3, 4  ;;  %v533_v11 = vsel %vm532_vm3, %v529_v53, %v531_v8 }
  0xd7   : > { %v536_v12 = vsel %vm535_vm4, %v534_v9, %v533_v11 }
  0xd8   : > { %v528_v10 = vsel %vm524_vm1, %v510_v5, %v523_v6  ;;  %v538_v14 = vsel %vm537_vm5, %v534_v9, %v536_v12 }
  0xd9   : > { %v539_v13 = vrot.slane %v528_v10, 5 }
  0xdb   : > { %v541_v15 = vsel %vm540_vm6, %v539_v13, %v538_v14 }
  0xdc   : > { %v543_v16 = vsel %vm542_vm7, %v539_v13, %v541_v15 }
  0xdd   : > { %545 = vst [vmem:[%s196_s12] sm:$0xff] %v543_v16 }
  0xde   : > { %786 = shalt.err (!%p783_p5)
}
  0xdf   : > { %704 = dma.vmem_to_hbm [thread:$0]  (%p894_p4), %s565_s16, 128, %s567_s18, %s547_s20  }
  0xe0 PF: > { %p710_p6 = scmp.ge.s32.totalorder %s837_s14, 2  ;;  %s578_s30 = sand.u32 1, %s817_s9  }
  0xe1   : > { %s579_s3 = scalar_lea.sflag [#allocation3], %s578_s30 }
  0xe2   : > { %p707_p7 = pnand %p710_p6, %p901_p8 }
  0xe4   : > { %p708_p9 = pneg %p707_p7 }
  0xe6   : > { %812 = dma.done.wait (%p708_p9), %s579_s3, 128  }
  0xe7   : > { %814 = vsyncadd (%p708_p9), %s579_s3, 4294967168  ;;  %s15_s14 = sadd.s32 1, %s837_s14   ;;  %s1020_s9 = smov %s821_s10 }
  0xe8   : > { %p12_p10 = scmp.ge.s32.totalorder %s15_s14, 4   ;;  %s1021_s10 = smov %s825_s11 }
  0xe9   : > { %s1022_s11 = smov %s907_s22  ;;  %s1023_s12 = smov %s833_s13 }
  0xea   : > { %s1024_s13 = smov %s1026_s17  ;;  %14 = sbr.rel (!%p12_p10) target bundleno = 4 (0x4), region = 66 }
  0xef   :  { %585 = vsyncpa [#allocation3], 1 }
  0xf0   :  { %587 = vsyncpa [#allocation3 + $0x1], 1 }

</bundles_post_ra>
